<compile_context>
chip_gen: v7x
topology: tpu7x:2x2x1
jax: 0.10.0
libtpu: 0.0.40
codegen_flags: <defaults>
</compile_context>

<pallas_src>
import jax
import jax.numpy as jnp
from jax import lax
from jax.experimental import pallas as pl
from jax.experimental.pallas import tpu as pltpu

_BYPASS_ELEMS = 4096   # below this, a plain jnp path beats a kernel launch


def _cdiv(a, b):
    return -(-a // b)


def _mix32(v, seed_u32):
    """lowbias32-style integer mixer (pure VPU int ops, no hardware PRNG)."""
    h = v + seed_u32 * jnp.uint32(0x9E3779B9)
    h = h ^ (h >> 16)
    h = h * jnp.uint32(0x7FEB352D)
    h = h ^ (h >> 15)
    h = h * jnp.uint32(0x846CA68B)
    h = h ^ (h >> 16)
    return h


def _keep_from_index(idx_u32, seed_u32, thr_u32):
    """Keep-mask from global flat element index.

    One 32-bit hash is shared by a pair of adjacent elements; each element
    takes a distinct 16-bit field -> half the hashing work per element.
    keep iff uniform16 > p * 2^16  (matches torch's `rand > p`).
    """
    h = _mix32(idx_u32 >> 1, seed_u32)
    odd = (idx_u32 & jnp.uint32(1)) != 0
    h = jnp.where(odd, h >> 16, h)
    return (h & jnp.uint32(0xFFFF)) > thr_u32


def _linear_dropout_kernel(scalars_ref, x_ref, xj_ref, o_ref, oj_ref):
    tile_rows, cols = x_ref.shape
    seed_u = scalars_ref[0].astype(jnp.uint32)
    thr_u = scalars_ref[1].astype(jnp.uint32)

    # Global (tiling-invariant) flat element index for this block.
    row0 = pl.program_id(0) * tile_rows
    row_ids = lax.broadcasted_iota(jnp.int32, (tile_rows, cols), 0) + row0
    col_ids = lax.broadcasted_iota(jnp.int32, (tile_rows, cols), 1)
    idx = row_ids.astype(jnp.uint32) * jnp.uint32(cols) + col_ids.astype(jnp.uint32)

    keep = _keep_from_index(idx, seed_u, thr_u)

    x = x_ref[...]
    xj = xj_ref[...]
    zero = jnp.zeros((), dtype=x.dtype)
    # Same mask applied to both tensors, selected in the native dtype
    # (no f32 promotion on the store path).
    o_ref[...] = jnp.where(keep, x, zero)
    oj_ref[...] = jnp.where(keep, xj, zero)


def _tpu_kind():
    try:
        return jax.devices()[0].device_kind.lower()
    except Exception:
        return ""


def _target_block_bytes():
    # ~2 MiB blocks -> 4 arrays x 2 buffers ~= 16 MiB (safe with the raised
    # limit on v5e and within v7x's 64 MiB VMEM).  v6e's 128 MiB VMEM lets us
    # double the tile to halve per-grid-step overhead.
    return (4 << 20) if "v6" in _tpu_kind() else (2 << 20)


def linear_dropout(x, x_jvp, *, p=0.5, seed=0, training=True, donate_inputs=False):
    """Pallas TPU implementation of LinearDropout.forward.

    Returns (masked_input, masked_input_jvp) in training mode (same Bernoulli
    keep mask applied to both), or the inputs unchanged in eval mode.
    """
    if not training:
        return x, x_jvp

    assert x.shape == x_jvp.shape, "input and input_jvp must share a shape"
    assert x.dtype == x_jvp.dtype, "input and input_jvp must share a dtype"

    # Exact-parity edge cases.
    if p <= 0.0:
        return x, x_jvp
    if p >= 1.0:
        return jnp.zeros_like(x), jnp.zeros_like(x_jvp)

    shape, dtype = x.shape, x.dtype
    n = x.size
    itemsize = jnp.dtype(dtype).itemsize
    seed_i32 = int(seed) & 0x7FFFFFFF
    thr = min(max(int(round(float(p) * 65536.0)), 0), 65536)  # 16-bit keep threshold

    # Tiny inputs: kernel launch + tile padding can never win -> inline path
    # (identical hash, so the mask matches the kernel for the same seed).
    if n < _BYPASS_ELEMS:
        idx = jnp.arange(n, dtype=jnp.uint32).reshape(shape)
        keep = _keep_from_index(idx, jnp.uint32(seed_i32), jnp.uint32(thr))
        zero = jnp.zeros((), dtype=dtype)
        return jnp.where(keep, x, zero), jnp.where(keep, x_jvp, zero)

    # Lane-dense 2-D view; choose cols so the reshape is free (no pad copy)
    # for any numel that is a multiple of 128.
    if n % 512 == 0:
        cols = 512
    elif n % 256 == 0:
        cols = 256
    else:
        cols = 128
    rows = _cdiv(n, cols)
    padded = rows * cols

    if padded == n:
        xf = x.reshape(rows, cols)
        xjf = x_jvp.reshape(rows, cols)
    else:
        # Rare ragged tail (< 128 elements of padding).
        xf = jnp.pad(jnp.ravel(x), (0, padded - n)).reshape(rows, cols)
        xjf = jnp.pad(jnp.ravel(x_jvp), (0, padded - n)).reshape(rows, cols)

    # Dtype-aware sublane alignment: (8,128) f32, (16,128) bf16, (32,128) int8.
    align = max(8, 32 // itemsize)
    max_tile_rows = max(align, (_target_block_bytes() // (cols * itemsize)) // align * align)

    if rows < 2 * align:
        tile_rows = rows                              # single full-extent block (always legal)
    else:
        # >= 2 tiles so the "parallel" axis shards across both v7x TensorCores.
        num_tiles = max(_cdiv(rows, max_tile_rows), 2)
        tile_rows = _cdiv(_cdiv(rows, num_tiles), align) * align
    num_tiles = _cdiv(rows, tile_rows)                # Pallas handles a ragged last block

    scalars = jnp.asarray([seed_i32, thr], dtype=jnp.int32)
    spec = pl.BlockSpec((tile_rows, cols), lambda i, s: (i, 0))

    block_bytes = tile_rows * cols * itemsize
    # 4 arrays x 2 pipeline buffers + headroom; clamp to [32 MiB, 48 MiB]
    # (v5e default 16 MiB is too small; v7x has only 64 MiB physical).
    vmem_limit = int(min(max(8 * block_bytes + (8 << 20), 32 << 20), 48 << 20))

    # Optional donation (indices include the scalar-prefetch operand at 0).
    # Off by default: if the caller still needs x/x_jvp, XLA would insert
    # defensive copies and add HBM traffic.
    aliases = {1: 0, 2: 1} if (donate_inputs and padded == n) else {}

    out_f, out_jvp_f = pl.pallas_call(
        _linear_dropout_kernel,
        out_shape=(
            jax.ShapeDtypeStruct((rows, cols), dtype),
            jax.ShapeDtypeStruct((rows, cols), dtype),
        ),
        grid_spec=pltpu.PrefetchScalarGridSpec(
            num_scalar_prefetch=1,
            grid=(num_tiles,),
            in_specs=[spec, spec],
            out_specs=[spec, spec],
        ),
        compiler_params=pltpu.CompilerParams(
            dimension_semantics=("parallel",),
            vmem_limit_bytes=vmem_limit,
        ),
        cost_estimate=pl.CostEstimate(
            flops=0,
            transcendentals=0,
            bytes_accessed=4 * padded * itemsize,
        ),
        input_output_aliases=aliases,
    )(scalars, xf, xjf)

    if padded == n:
        return out_f.reshape(shape), out_jvp_f.reshape(shape)
    out = out_f.reshape(-1)[:n].reshape(shape)
    out_jvp = out_jvp_f.reshape(-1)[:n].reshape(shape)
    return out, out_jvp


if __name__ == "__main__":
    key = jax.random.PRNGKey(0)
    k1, k2, k3, k4 = jax.random.split(key, 4)

    # Kernel path: (batch=2, seq=8, hidden=512) -> copy-free (16, 512) slab,
    # two (8, 512) row tiles on the parallel grid.
    x = jax.random.normal(k1, (2, 8, 512), dtype=jnp.float32)
    x_jvp = jax.random.normal(k2, (2, 8, 512), dtype=jnp.float32)

    out, out_jvp = linear_dropout(x, x_jvp, p=0.5, seed=1234, training=True)
    out, out_jvp = jax.block_until_ready((out, out_jvp))

    assert out.shape == x.shape and out_jvp.shape == x_jvp.shape

    # Each output element is the input value or exactly zero, with the SAME
    # mask applied to both tensors.
    kept = out != 0
    assert bool(jnp.all(jnp.where(kept, out == x, out == 0.0)))
    assert bool(jnp.all(jnp.where(kept, out_jvp == x_jvp, out_jvp == 0.0)))

    # Keep fraction ~= 1 - p.
    frac = float(jnp.mean(kept.astype(jnp.float32)))
    assert 0.3 < frac < 0.7, frac

    # Tiny-shape bypass path (module-style batch=2, seq=8, hidden=32).
    xs = jax.random.normal(k3, (2, 8, 32), dtype=jnp.float32)
    xjs = jax.random.normal(k4, (2, 8, 32), dtype=jnp.float32)
    so, soj = linear_dropout(xs, xjs, p=0.5, seed=7, training=True)
    so, soj = jax.block_until_ready((so, soj))
    keptr = so != 0
    assert bool(jnp.all(jnp.where(keptr, so == xs, so == 0.0)))
    assert bool(jnp.all(jnp.where(keptr, soj == xjs, soj == 0.0)))

    # Eval mode is identity.
    e_out, e_out_jvp = linear_dropout(x, x_jvp, p=0.5, training=False)
    assert bool(jnp.all(e_out == x)) and bool(jnp.all(e_out_jvp == x_jvp))

    print("KERNEL_OK")
</pallas_src>

<mosaic_0001>
module attributes {stable_mosaic.version = 11 : i64} {
  func.func @_linear_dropout_kernel(%arg0: i32, %arg1: memref<2xi32, #tpu.memory_space<smem>>, %arg2: memref<8x512xf32, #tpu.memory_space<vmem>>, %arg3: memref<8x512xf32, #tpu.memory_space<vmem>>, %arg4: memref<8x512xf32, #tpu.memory_space<vmem>>, %arg5: memref<8x512xf32, #tpu.memory_space<vmem>>) attributes {dimension_semantics = [#tpu.dimension_semantics<parallel>], iteration_bounds = array<i64: 2>, scalar_prefetch = 1 : i64, scratch_operands = 0 : i64, tpu.core_type = #tpu.core_type<tc>, window_params = [{transform_indices = @transform_0, window_bounds = array<i64: 8, 512>}, {transform_indices = @transform_1, window_bounds = array<i64: 8, 512>}, {transform_indices = @transform_2, window_bounds = array<i64: 8, 512>}, {transform_indices = @transform_3, window_bounds = array<i64: 8, 512>}]} {
    %c0 = arith.constant 0 : index
    %0 = memref.load %arg1[%c0] : memref<2xi32, #tpu.memory_space<smem>>
    %c1 = arith.constant 1 : index
    %1 = memref.load %arg1[%c1] : memref<2xi32, #tpu.memory_space<smem>>
    %c8_i32 = arith.constant 8 : i32
    %2 = arith.muli %arg0, %c8_i32 : i32
    %3 = tpu.iota {dimensions = array<i32: 0>} : vector<8x512xi32>
    %4 = vector.broadcast %2 : i32 to vector<8x512xi32>
    %5 = arith.addi %3, %4 : vector<8x512xi32>
    %6 = tpu.iota {dimensions = array<i32: 1>} : vector<8x512xi32>
    %c512_i32 = arith.constant 512 : i32
    %7 = vector.broadcast %c512_i32 : i32 to vector<8x512xi32>
    %8 = arith.muli %5, %7 : vector<8x512xi32>
    %9 = arith.addi %8, %6 : vector<8x512xi32>
    %c1_i32 = arith.constant 1 : i32
    %10 = vector.broadcast %c1_i32 : i32 to vector<8x512xi32>
    %11 = arith.shrui %9, %10 : vector<8x512xi32>
    %c-1640531527_i32 = arith.constant -1640531527 : i32
    %12 = arith.muli %0, %c-1640531527_i32 : i32
    %13 = vector.broadcast %12 : i32 to vector<8x512xi32>
    %14 = arith.addi %11, %13 : vector<8x512xi32>
    %c16_i32 = arith.constant 16 : i32
    %15 = vector.broadcast %c16_i32 : i32 to vector<8x512xi32>
    %16 = arith.shrui %14, %15 : vector<8x512xi32>
    %17 = arith.xori %14, %16 : vector<8x512xi32>
    %c2146121005_i32 = arith.constant 2146121005 : i32
    %18 = vector.broadcast %c2146121005_i32 : i32 to vector<8x512xi32>
    %19 = arith.muli %17, %18 : vector<8x512xi32>
    %c15_i32 = arith.constant 15 : i32
    %20 = vector.broadcast %c15_i32 : i32 to vector<8x512xi32>
    %21 = arith.shrui %19, %20 : vector<8x512xi32>
    %22 = arith.xori %19, %21 : vector<8x512xi32>
    %c-2073254261_i32 = arith.constant -2073254261 : i32
    %23 = vector.broadcast %c-2073254261_i32 : i32 to vector<8x512xi32>
    %24 = arith.muli %22, %23 : vector<8x512xi32>
    %c16_i32_0 = arith.constant 16 : i32
    %25 = vector.broadcast %c16_i32_0 : i32 to vector<8x512xi32>
    %26 = arith.shrui %24, %25 : vector<8x512xi32>
    %27 = arith.xori %24, %26 : vector<8x512xi32>
    %c1_i32_1 = arith.constant 1 : i32
    %28 = vector.broadcast %c1_i32_1 : i32 to vector<8x512xi32>
    %29 = arith.andi %9, %28 : vector<8x512xi32>
    %c0_i32 = arith.constant 0 : i32
    %30 = vector.broadcast %c0_i32 : i32 to vector<8x512xi32>
    %31 = arith.cmpi ne, %29, %30 : vector<8x512xi32>
    %c16_i32_2 = arith.constant 16 : i32
    %32 = vector.broadcast %c16_i32_2 : i32 to vector<8x512xi32>
    %33 = arith.shrui %27, %32 : vector<8x512xi32>
    %34 = arith.select %31, %33, %27 : vector<8x512xi1>, vector<8x512xi32>
    %c65535_i32 = arith.constant 65535 : i32
    %35 = vector.broadcast %c65535_i32 : i32 to vector<8x512xi32>
    %36 = arith.andi %34, %35 : vector<8x512xi32>
    %37 = vector.broadcast %1 : i32 to vector<8x512xi32>
    %38 = arith.cmpi ugt, %36, %37 : vector<8x512xi32>
    %c0_3 = arith.constant 0 : index
    %c0_4 = arith.constant 0 : index
    %39 = vector.load %arg2[%c0_3, %c0_4] : memref<8x512xf32, #tpu.memory_space<vmem>>, vector<8x512xf32>
    %c0_5 = arith.constant 0 : index
    %c0_6 = arith.constant 0 : index
    %40 = vector.load %arg3[%c0_5, %c0_6] : memref<8x512xf32, #tpu.memory_space<vmem>>, vector<8x512xf32>
    %cst = arith.constant 0.000000e+00 : f32
    %41 = vector.broadcast %cst : f32 to vector<8x512xf32>
    %42 = arith.select %38, %39, %41 : vector<8x512xi1>, vector<8x512xf32>
    %c0_7 = arith.constant 0 : index
    %c0_8 = arith.constant 0 : index
    %43 = vector.load %arg4[%c0_7, %c0_8] : memref<8x512xf32, #tpu.memory_space<vmem>>, vector<8x512xf32>
    tpu.vector_store %arg4[%c0_7, %c0_8], %42 {strides = array<i32>} : memref<8x512xf32, #tpu.memory_space<vmem>>, vector<8x512xf32>,
    %cst_9 = arith.constant 0.000000e+00 : f32
    %44 = vector.broadcast %cst_9 : f32 to vector<8x512xf32>
    %45 = arith.select %38, %40, %44 : vector<8x512xi1>, vector<8x512xf32>
    %c0_10 = arith.constant 0 : index
    %c0_11 = arith.constant 0 : index
    %46 = vector.load %arg5[%c0_10, %c0_11] : memref<8x512xf32, #tpu.memory_space<vmem>>, vector<8x512xf32>
    tpu.vector_store %arg5[%c0_10, %c0_11], %45 {strides = array<i32>} : memref<8x512xf32, #tpu.memory_space<vmem>>, vector<8x512xf32>,
    return
  }
  func.func @transform_0(%arg0: i32, %arg1: memref<2xi32, #tpu.memory_space<smem>>) -> (i32, i32) {
    %c0_i32 = arith.constant 0 : i32
    %c0_i32_0 = arith.constant 0 : i32
    return %arg0, %c0_i32 : i32, i32
  }
  func.func @transform_1(%arg0: i32, %arg1: memref<2xi32, #tpu.memory_space<smem>>) -> (i32, i32) {
    %c0_i32 = arith.constant 0 : i32
    %c0_i32_0 = arith.constant 0 : i32
    return %arg0, %c0_i32 : i32, i32
  }
  func.func @transform_2(%arg0: i32, %arg1: memref<2xi32, #tpu.memory_space<smem>>) -> (i32, i32) {
    %c0_i32 = arith.constant 0 : i32
    %c0_i32_0 = arith.constant 0 : i32
    return %arg0, %c0_i32 : i32, i32
  }
  func.func @transform_3(%arg0: i32, %arg1: memref<2xi32, #tpu.memory_space<smem>>) -> (i32, i32) {
    %c0_i32 = arith.constant 0 : i32
    %c0_i32_0 = arith.constant 0 : i32
    return %arg0, %c0_i32 : i32, i32
  }
}

</mosaic_0001>

<bundles_post_ra>
// kernel: tpu_custom_call.1
= control target key start
LH: loop header
LB: loop body
LE: loop exit
PB: predicated region body
PF: predicated region fallthrough
CT: control target
= control target key end

     0   :  { %s1120_s0 = inlined_call_operand.hbm [shape: s32[2], index: 0, kind: input, shape index: {}]   ;;  %s1121_s1 = inlined_call_operand.hbm [shape: f32[16,512], index: 1, kind: input, shape index: {}]   ;;  %s1122_s2 = inlined_call_operand.hbm [shape: f32[16,512], index: 2, kind: input, shape index: {}]   ;;  %s1123_s3 = inlined_call_operand.hbm [shape: f32[16,512], index: 3, kind: output, shape index: {0}]   ;;  %s1124_s4 = inlined_call_operand.hbm [shape: f32[16,512], index: 4, kind: output, shape index: {1}]  }
   0x1   :  { %s593_s17 = scalar_lea.hbm %s1120_s0, 16 }
   0x2   :  { %p594_p0 = scmp.ne.s32.totalorder %s1120_s0, %s593_s17  ;;  %p597_p1 = scmp.lt.u32.totalorder %s593_s17, %s1120_s0 }
   0x4   :  { %p599_p2 = pnand %p597_p1, %p594_p0 }
   0x6   :  { %602 = shalt.err (!%p599_p2)  }
   0x7   :  { %s769_s22 = smov [#allocation3]  }
   0x8   :  { %11 = dma.hbm_to_smem %s1120_s0, 16, %s769_s22, [#allocation2] }
   0x9   :  { %735 = dma.done.wait [#allocation2], 16 }
   0xa   :  { %736 = vsyncadd [#allocation2], 4294967280 }
   0xb   :  { %13 = sfence }
   0xc   :  { %14 = vsyncpa [#allocation5], 0 }
   0xd   :  { %16 = vsyncpa [#allocation5 + $0x1], 0 }
   0xe   :  { %17 = vsyncpa [#allocation8], 0 }
   0xf   :  { %19 = vsyncpa [#allocation8 + $0x1], 0 }
  0x10   :  { %20 = vsyncpa [#allocation6], 0 }
  0x11   :  { %22 = vsyncpa [#allocation6 + $0x1], 0 }
  0x12   :  { %23 = vsyncpa [#allocation11], 0 }
  0x13   :  { %25 = vsyncpa [#allocation11 + $0x1], 0  ;;  %s811_s25 = smov 0   ;;  %s813_s26 = smov 0  }
  0x14   :  { %s815_s27 = smov 0   ;;  %s817_s28 = smov 0  }
  0x15 LB: > { %s832_s0 = sadd.s32 4294967295, %s767_s28   ;;  %s508_s29 = sadd.s32 4294967294, %s767_s28   ;;  %s767_s28 = sphi %s817_s28, %s1153_s28   ;;  %s763_s27 = sphi %s815_s27, %s1152_s27   ;;  %s759_s26 = sphi %s813_s26, %s1151_s26   ;;  %s755_s25 = sphi %s811_s25, %s1150_s25  }
  0x16   : > { %s836_s30 = sadd.s32 1, %s767_s28   ;;  %s38_s5 = sadd.s32 1, %s763_s27 }
  0x17   : > { %s35_s6 = ssub.s32 %s767_s28, %s836_s30  ;;  %p45_p3 = scmp.ne.s32.totalorder %s763_s27, %s759_s26 }
  0x18   : > { %p36_p4 = scmp.eq.s32.totalorder %s35_s6, 0  ;;  %p46_p5 = scmp.eq.s32.totalorder %s767_s28, 0 }
  0x19   : > { %p51_p6 = scmp.ne.s32.totalorder %s759_s26, %s755_s25  ;;  %p52_p7 = scmp.eq.s32.totalorder %s832_s0, 0 }
  0x1a   : > { %s848_s7 = scalar_select %p36_p4, %s763_s27, %s38_s5  }
  0x1b   : > { %p850_p8 = por %p46_p5, %p45_p3  ;;  %p854_p9 = por %p52_p7, %p51_p6 }
  0x1c   : > { %p101_p10 = scmp.eq.s32.totalorder %s832_s0, 1  ;;  %p107_p11 = scmp.eq.s32.totalorder %s508_s29, 1 }
  0x1d   : > { %s1128_s9 = scalar_select %p854_p9, 1, 0 }
  0x1e   : > { %p558_p13 = scmp.lt.s32.totalorder %s767_s28, 2  ;;  %p861_p0 = por %p101_p10, %p45_p3 }
  0x1f   : > { %p865_p1 = por %p107_p11, %p51_p6  ;;  %s870_s12 = sand.u32 1, %s763_s27  }
  0x20   : > { %s1129_s10 = scalar_select %p861_p0, 1, 0 }
  0x21   : > { %s1130_s11 = scalar_select %p865_p1, 1, 0 }
  0x22   : > { %s532_s13 = sshll.u32 %s767_s28, 9  ;;  %s511_s14 = sshll.u32 %s870_s12, 5 }
  0x23   : > { %s879_s17 = scalar_lea.hbm %s1121_s1, %s532_s13  ;;  %s157_s18 = scalar_lea.vmem [#allocation4], %s511_s14 }
  0x24   : > { %s165_s19 = sshll.u32 %s157_s18, 4  ;;  %p885_p2 = pnand %p558_p13, %p850_p8  ;;  %s889_s19 = int_to_ptr.vmem [resolvable:$true] %s165_s19 }
  0x25   : > { %s154_s21 = scalar_lea.sflag [#allocation5], %s870_s12  ;;  %s603_s22 = scalar_lea.hbm %s879_s17, 512 }
  0x26   : > { %p604_p5 = scmp.ne.s32.totalorder %s879_s17, %s603_s22  ;;  %p605_p6 = pneg %p885_p2 }
  0x27   : > { %s608_s29 = scalar_lea.hbm %s1121_s1, 1024  ;;  %p609_p8 = scmp.lt.u32.totalorder %s879_s17, %s1121_s1 }
  0x28   : > { %p606_p7 = pnand %p605_p6, %p604_p5  ;;  %p610_p11 = scmp.lt.u32.totalorder %s608_s29, %s603_s22 }
  0x29   : > { %p612_p12 = scmp.lt.u32.totalorder %s603_s22, %s879_s17 }
  0x2a   : > { %p607_p10 = pneg %p606_p7  ;;  %p611_p13 = por %p610_p11, %p609_p8 }
  0x2c   : > { %p613_p3 = por %p612_p12, %p611_p13 }
  0x2e   : > { %p614_p4 = pnand %p613_p3, %p607_p10 }
  0x30   : > { %617 = shalt.err (!%p614_p4)
}
  0x31   : > { %s618_s8 = scalar_lea.vmem %s889_s19, 512  ;;  %s770_s15 = smov [#allocation4]  }
  0x32   : > { %p619_p5 = scmp.ne.s32.totalorder %s889_s19, %s618_s8  ;;  %s623_s16 = sshll.u32 %s770_s15, 4  ;;  %s624_s16 = int_to_ptr.vmem [resolvable:$false] %s623_s16 }
  0x33   : > { %s625_s18 = scalar_lea.vmem %s624_s16, 1024  ;;  %p626_p0 = scmp.lt.s32.totalorder %s889_s19, %s624_s16 }
  0x34   : > { %p621_p7 = pnand %p619_p5, %p605_p6  ;;  %p627_p8 = scmp.lt.s32.totalorder %s625_s18, %s618_s8 }
  0x36   : > { %p622_p1 = pneg %p621_p7  ;;  %p628_p11 = por %p627_p8, %p626_p0 }
  0x38   : > { %p629_p12 = pnand %p628_p11, %p622_p1 }
  0x3a   : > { %632 = shalt.err (!%p629_p12)
}
  0x3b   : > { %547 = dma.hbm_to_vmem [thread:$0]  (!%p885_p2), %s879_s17, 512, %s889_s19, %s154_s21  }
  0x3c   : > { %p1132_p3 = scmp.lt.s32.totalorder %s767_s28, 3  ;;  %p1133_p4 = scmp.ge.s32.totalorder %s767_s28, 1 }
  0x3d   : > { %s932_s29 = scalar_lea.hbm %s1122_s2, %s532_s13  ;;  %s176_s5 = scalar_lea.vmem [#allocation7], %s511_s14 }
  0x3e   : > { %p923_p10 = pnand %p1133_p4, %p1132_p3  ;;  %s184_s6 = sshll.u32 %s176_s5, 4  ;;  %s185_s6 = int_to_ptr.vmem [resolvable:$true] %s184_s6 }
  0x3f   : > { %s173_s17 = scalar_lea.sflag [#allocation8], %s870_s12  ;;  %s633_s19 = scalar_lea.hbm %s932_s29, 512 }
  0x40   : > { %s1134_s22 = scalar_select %p923_p10, 1, 0 }
  0x41   : > { %p634_p0 = scmp.ne.s32.totalorder %s932_s29, %s633_s19  ;;  %s638_s13 = scalar_lea.hbm %s1122_s2, 1024 }
  0x42   : > { %p639_p5 = scmp.lt.u32.totalorder %s932_s29, %s1122_s2  ;;  %p640_p7 = scmp.lt.u32.totalorder %s638_s13, %s633_s19 }
  0x43   : > { %p636_p1 = pnand %p634_p0, %p605_p6  ;;  %p642_p11 = scmp.lt.u32.totalorder %s633_s19, %s932_s29 }
  0x44   : > { %p641_p8 = por %p640_p7, %p639_p5 }
  0x45   : > { %p637_p13 = pneg %p636_p1 }
  0x46   : > { %p643_p12 = por %p642_p11, %p641_p8 }
  0x48   : > { %p644_p3 = pnand %p643_p12, %p637_p13 }
  0x4a   : > { %647 = shalt.err (!%p644_p3)
}
  0x4b   : > { %s648_s12 = scalar_lea.vmem %s185_s6, 512  ;;  %s771_s14 = smov [#allocation7]  }
  0x4c   : > { %p649_p4 = scmp.ne.s32.totalorder %s185_s6, %s648_s12  ;;  %s653_s18 = sshll.u32 %s771_s14, 4  ;;  %s654_s18 = int_to_ptr.vmem [resolvable:$false] %s653_s18 }
  0x4d   : > { %s655_s23 = scalar_lea.vmem %s654_s18, 1024  ;;  %p656_p9 = scmp.lt.s32.totalorder %s185_s6, %s654_s18 }
  0x4e   : > { %p651_p0 = pnand %p649_p4, %p605_p6  ;;  %p657_p10 = scmp.lt.s32.totalorder %s655_s23, %s648_s12 }
  0x50   : > { %p652_p1 = pneg %p651_p0  ;;  %p658_p5 = por %p657_p10, %p656_p9 }
  0x52   : > { %p659_p7 = pnand %p658_p5, %p652_p1 }
  0x54   : > { %662 = shalt.err (!%p659_p7)
}
  0x55   : > { %550 = dma.hbm_to_vmem [thread:$0]  (!%p885_p2), %s932_s29, 512, %s185_s6, %s173_s17  }
  0x56   : > { %p1135_p13 = scmp.ne.s32.totalorder %s1134_s22, 0 }
  0x57   : > { %s959_s24 = sand.u32 (!%p1135_p13), 1, %s759_s26   ;;  %p1136_p9 = scmp.ne.s32.totalorder (!%p1135_p13), %s1128_s9, 0 }
  0x58   : > { %193 = sbr.rel (%p1135_p13) target bundleno = 175 (0xaf), region = 28  ;;  %s962_s5 = sshll.u32 (!%p1135_p13), %s959_s24, 5 }
  0x59   : > { %s196_s19 = scalar_lea.sflag (!%p1135_p13), [#allocation5], %s959_s24  ;;  %s966_s21 = scalar_lea.vmem (!%p1135_p13), [#allocation4], %s962_s5 }
  0x5f   : > { %738 = dma.done.wait (%p1136_p9), %s196_s19, 512  }
  0x60   : > { %740 = vsyncadd (%p1136_p9), %s196_s19, 4294966784  ;;  %s205_s20 = scalar_lea.sflag [#allocation8], %s959_s24  ;;  %s974_s22 = scalar_lea.vmem [#allocation7], %s962_s5 }
  0x61   : > { %742 = dma.done.wait (%p1136_p9), %s205_s20, 512  }
  0x62   : > { %744 = vsyncadd (%p1136_p9), %s205_s20, 4294966784  ;;  %s523_s29 = sshll.u32 %s832_s0, 3  ;;  %v244_v0 = vlaneseq  ;;  %s241_s6 = sld [smem:[#allocation3]] }
  0x63   : > { %v246_v1 = vstv %s523_s29  ;;  %s522_s9 = sld [smem:[#allocation3 + $0x1]]  ;;  %s986_s8 = scalar_lea.vmem [#allocation9], %s962_s5 }
  0x64   : > { %v245_v2 = vshrl.u32 %v244_v0, 7  ;;  %v249_v3 = vand.u32 127, %v244_v0  ;;  %s369_s13 = sshll.u32 %s986_s8, 4  ;;  %s990_s15 = scalar_lea.vmem [#allocation10], %s962_s5  ;;  %s1006_s13 = int_to_ptr.vmem [resolvable:$true] %s369_s13 }
  0x65   : > { %s383_s16 = sshll.u32 %s990_s15, 4  ;;  %s534_s12 = sshll.u32 %s832_s0, 9  ;;  %s1012_s16 = int_to_ptr.vmem [resolvable:$true] %s383_s16 }
  0x66   : > { %v247_v4 = vadd.s32 %v246_v1, %v245_v2  ;;  %v250_v5 = vadd.s32 128, %v249_v3  ;;  %v251_v6 = vadd.s32 256, %v249_v3  ;;  %v252_v7 = vadd.s32 384, %v249_v3  ;;  %s1031_s18 = scalar_lea.hbm %s1123_s3, %s534_s12  ;;  %s1046_s19 = scalar_lea.hbm %s1124_s4, %s534_s12 }
  0x67   : > { %s663_s20 = scalar_lea.vmem %s1006_s13, 512  ;;  %p1147_p6 = scmp.ne.s32.totalorder %s1129_s10, 0 }
  0x68   : > { %v253_v8 = vmul.u32 512, %v247_v4  ;;  %s262_s17 = smul.u32 2654435769, %s241_s6  ;;  %p664_p2 = scmp.ne.s32.totalorder %s1006_s13, %s663_s20 }
  0x69   : > { %v320_v0 = vstv %s522_s9 }
  0x6a   : > { %v254_v9 = vadd.s32 %v253_v8, %v249_v3  ;;  %v255_v10 = vadd.s32 %v253_v8, %v250_v5  ;;  %v256_v11 = vadd.s32 %v253_v8, %v251_v6  ;;  %v257_v12 = vadd.s32 %v253_v8, %v252_v7  ;;  %v325_v3 = vld [vmem:[%s966_s21] sm:$0xff]  ;;  %v326_v5 = vld [vmem:[%s966_s21 + $0x8] sm:$0xff]  ;;  %v327_v7 = vld [vmem:[%s966_s21 + $0x10] sm:$0xff]  ;;  %p665_p10 = pnand %p664_p2, %p1147_p6 }
  0x6b   : > { %v263_v13 = vstv %s262_s17 }
  0x6c   : > { %v258_v14 = vshrl.u32 %v254_v9, 1  ;;  %v259_v15 = vshrl.u32 %v255_v10, 1  ;;  %v260_v16 = vshrl.u32 %v256_v11, 1  ;;  %v261_v17 = vshrl.u32 %v257_v12, 1  ;;  %p666_p8 = pneg %p665_p10 }
  0x6d   : > { %v300_v44 = vand.u32 1, %v254_v9  ;;  %v301_v45 = vand.u32 1, %v255_v10  ;;  %v302_v50 = vand.u32 1, %v256_v11  ;;  %v303_v51 = vand.u32 1, %v257_v12  ;;  %v328_v11 = vld [vmem:[%s966_s21 + $0x18] sm:$0xff]  ;;  %v329_v12 = vld [vmem:[%s974_s22] sm:$0xff] }
  0x6e   : > { %v264_v18 = vadd.s32 %v263_v13, %v258_v14  ;;  %v265_v19 = vadd.s32 %v263_v13, %v259_v15  ;;  %v266_v20 = vadd.s32 %v263_v13, %v260_v16  ;;  %v267_v21 = vadd.s32 %v263_v13, %v261_v17  ;;  %v330_v13 = vld [vmem:[%s974_s22 + $0x8] sm:$0xff]  ;;  %v331_v16 = vld [vmem:[%s974_s22 + $0x10] sm:$0xff]  ;;  %v332_v17 = vld [vmem:[%s974_s22 + $0x18] sm:$0xff]  ;;  %s350_s21 = scalar_lea.sflag [#allocation6], %s959_s24  ;;  %s772_s22 = smov [#allocation9]  }
  0x6f   : > { %vm304_vm0 = vcmp.ne.s32.totalorder %v300_v44, 0  ;;  %vm305_vm1 = vcmp.ne.s32.totalorder %v301_v45, 0  ;;  %vm306_vm2 = vcmp.ne.s32.totalorder %v302_v50, 0  ;;  %vm981_vm3 = vcmp.ne.s32.totalorder %v303_v51, 0  ;;  %s667_s29 = sshll.u32 %s772_s22, 4  ;;  %s668_s29 = int_to_ptr.vmem [resolvable:$false] %s667_s29 }
  0x70   : > { %v268_v22 = vshrl.u32 %v264_v18, 16  ;;  %v269_v23 = vshrl.u32 %v265_v19, 16  ;;  %v270_v24 = vshrl.u32 %v266_v20, 16  ;;  %v271_v25 = vshrl.u32 %v267_v21, 16  ;;  %s669_s6 = scalar_lea.vmem %s668_s29, 1024  ;;  %p670_p11 = scmp.lt.s32.totalorder %s1006_s13, %s668_s29 }
  0x71   : > { %p671_p12 = scmp.lt.s32.totalorder %s669_s6, %s663_s20 }
  0x72   : > { %v272_v26 = vxor.u32 %v268_v22, %v264_v18  ;;  %v273_v27 = vxor.u32 %v269_v23, %v265_v19  ;;  %v274_v28 = vxor.u32 %v270_v24, %v266_v20  ;;  %v275_v29 = vxor.u32 %v271_v25, %v267_v21 }
  0x73   : > { %p672_p3 = por %p671_p12, %p670_p11 }
  0x74   : > { %v276_v30 = vmul.u32 2146121005, %v272_v26  ;;  %v277_v31 = vmul.u32 2146121005, %v273_v27 }
  0x75   : > { %v278_v32 = vmul.u32 2146121005, %v274_v28  ;;  %v279_v33 = vmul.u32 2146121005, %v275_v29  ;;  %p673_p4 = pnand %p672_p3, %p666_p8 }
  0x76   : > { %v280_v34 = vshrl.u32 %v276_v30, 15  ;;  %v281_v35 = vshrl.u32 %v277_v31, 15 }
  0x77   : > { %v282_v36 = vshrl.u32 %v278_v32, 15  ;;  %v283_v37 = vshrl.u32 %v279_v33, 15 }
  0x78   : > { %v284_v38 = vxor.u32 %v280_v34, %v276_v30  ;;  %v285_v39 = vxor.u32 %v281_v35, %v277_v31 }
  0x79   : > { %v286_v40 = vxor.u32 %v282_v36, %v278_v32  ;;  %v287_v41 = vxor.u32 %v283_v37, %v279_v33 }
  0x7a   : > { %v288_v42 = vmul.u32 2221713035, %v284_v38  ;;  %v289_v43 = vmul.u32 2221713035, %v285_v39 }
  0x7b   : > { %v290_v46 = vmul.u32 2221713035, %v286_v40  ;;  %v291_v47 = vmul.u32 2221713035, %v287_v41 }
  0x7c   : > { %v292_v48 = vshrl.u32 %v288_v42, 16  ;;  %v293_v49 = vshrl.u32 %v289_v43, 16 }
  0x7d   : > { %v294_v52 = vshrl.u32 %v290_v46, 16  ;;  %v295_v53 = vshrl.u32 %v291_v47, 16 }
  0x7e   : > { %v296_v54 = vxor.u32 %v292_v48, %v288_v42  ;;  %v297_v55 = vxor.u32 %v293_v49, %v289_v43 }
  0x7f   : > { %v298_v56 = vxor.u32 %v294_v52, %v290_v46  ;;  %v299_v57 = vxor.u32 %v295_v53, %v291_v47 }
  0x80   : > { %v308_v58 = vshrl.u32 %v296_v54, 16  ;;  %v309_v59 = vshrl.u32 %v297_v55, 16 }
  0x81   : > { %v310_v61 = vshrl.u32 %v298_v56, 16  ;;  %v311_v62 = vshrl.u32 %v299_v57, 16 }
  0x82   : > { %v312_v63 = vsel %vm304_vm0, %v308_v58, %v296_v54  ;;  %v313_v1 = vsel %vm305_vm1, %v309_v59, %v297_v55 }
  0x83   : > { %v316_v2 = vand.u32 65535, %v312_v63  ;;  %v317_v4 = vand.u32 65535, %v313_v1  ;;  %v314_v6 = vsel %vm306_vm2, %v310_v61, %v298_v56  ;;  %v315_v8 = vsel %vm981_vm3, %v311_v62, %v299_v57 }
  0x84   : > { %v318_v9 = vand.u32 65535, %v314_v6  ;;  %v319_v10 = vand.u32 65535, %v315_v8 }
  0x85   : > { %vm1002_vm4 = vcmp.gt.u32.totalorder %v316_v2, %v320_v0  ;;  %vm1008_vm5 = vcmp.gt.u32.totalorder %v317_v4, %v320_v0 }
  0x86   : > { %v333_v18 = vsel %vm1002_vm4, %v325_v3, 0.0  ;;  %v334_v19 = vsel %vm1008_vm5, %v326_v5, 0.0  ;;  %vm1020_vm6 = vcmp.gt.u32.totalorder %v318_v9, %v320_v0  ;;  %vm1024_vm7 = vcmp.gt.u32.totalorder %v319_v10, %v320_v0 }
  0x87   : > { %337 = vst [vmem:[%s986_s8] sm:$0xff] %v333_v18  ;;  %338 = vst [vmem:[%s986_s8 + $0x8] sm:$0xff] %v334_v19  ;;  %v335_v22 = vsel %vm1020_vm6, %v327_v7, 0.0  ;;  %v336_v23 = vsel %vm1024_vm7, %v328_v11, 0.0  ;;  %v341_v24 = vsel %vm1002_vm4, %v329_v12, 0.0  ;;  %v342_v25 = vsel %vm1008_vm5, %v330_v13, 0.0 }
  0x88   : > { %339 = vst [vmem:[%s986_s8 + $0x10] sm:$0xff] %v335_v22  ;;  %340 = vst [vmem:[%s986_s8 + $0x18] sm:$0xff] %v336_v23  ;;  %v343_v26 = vsel %vm1020_vm6, %v331_v16, 0.0  ;;  %v344_v27 = vsel %vm1024_vm7, %v332_v17, 0.0 }
  0x89   : > { %345 = vst [vmem:[%s990_s15] sm:$0xff] %v341_v24  ;;  %346 = vst [vmem:[%s990_s15 + $0x8] sm:$0xff] %v342_v25 }
  0x8a   : > { %347 = vst [vmem:[%s990_s15 + $0x10] sm:$0xff] %v343_v26  ;;  %348 = vst [vmem:[%s990_s15 + $0x18] sm:$0xff] %v344_v27 }
  0x8b   : > { %676 = shalt.err (!%p673_p4)
}
  0x8c   : > { %s677_s17 = scalar_lea.hbm %s1031_s18, 512  ;;  %s681_s15 = scalar_lea.hbm %s1123_s3, 1024 }
  0x8d   : > { %p678_p0 = scmp.ne.s32.totalorder %s1031_s18, %s677_s17  ;;  %p682_p7 = scmp.lt.u32.totalorder %s1031_s18, %s1123_s3 }
  0x8e   : > { %p683_p13 = scmp.lt.u32.totalorder %s681_s15, %s677_s17  ;;  %p685_p2 = scmp.lt.u32.totalorder %s677_s17, %s1031_s18 }
  0x8f   : > { %p679_p1 = pnand %p678_p0, %p1147_p6 }
  0x90   : > { %p684_p9 = por %p683_p13, %p682_p7 }
  0x91   : > { %p680_p5 = pneg %p679_p1 }
  0x92   : > { %p686_p10 = por %p685_p2, %p684_p9 }
  0x94   : > { %p687_p8 = pnand %p686_p10, %p680_p5 }
  0x96   : > { %690 = shalt.err (!%p687_p8)
}
  0x97   : > { %540 = dma.vmem_to_hbm [thread:$0]  (%p1147_p6), %s1006_s13, 512, %s1031_s18, %s350_s21  }
  0x98   : > { %s355_s14 = scalar_lea.sflag [#allocation11], %s959_s24  ;;  %s691_s23 = scalar_lea.vmem %s1012_s16, 512 }
  0x99   : > { %p692_p11 = scmp.ne.s32.totalorder %s1012_s16, %s691_s23  ;;  %s773_s5 = smov [#allocation10]  }
  0x9a   : > { %s695_s20 = sshll.u32 %s773_s5, 4  ;;  %s696_s20 = int_to_ptr.vmem [resolvable:$false] %s695_s20 }
  0x9b   : > { %p693_p12 = pnand %p692_p11, %p1147_p6  ;;  %s697_s22 = scalar_lea.vmem %s696_s20, 1024 }
  0x9c   : > { %p698_p4 = scmp.lt.s32.totalorder %s1012_s16, %s696_s20  ;;  %p699_p0 = scmp.lt.s32.totalorder %s697_s22, %s691_s23 }
  0x9d   : > { %p694_p3 = pneg %p693_p12 }
  0x9e   : > { %p700_p1 = por %p699_p0, %p698_p4 }
  0xa0   : > { %p701_p5 = pnand %p700_p1, %p694_p3 }
  0xa2   : > { %704 = shalt.err (!%p701_p5)
}
  0xa3   : > { %s705_s24 = scalar_lea.hbm %s1046_s19, 512  ;;  %s709_s21 = scalar_lea.hbm %s1124_s4, 1024 }
  0xa4   : > { %p706_p7 = scmp.ne.s32.totalorder %s1046_s19, %s705_s24  ;;  %p710_p2 = scmp.lt.u32.totalorder %s1046_s19, %s1124_s4 }
  0xa5   : > { %p711_p10 = scmp.lt.u32.totalorder %s709_s21, %s705_s24  ;;  %p713_p11 = scmp.lt.u32.totalorder %s705_s24, %s1046_s19 }
  0xa6   : > { %p707_p13 = pnand %p706_p7, %p1147_p6 }
  0xa7   : > { %p712_p8 = por %p711_p10, %p710_p2 }
  0xa8   : > { %p708_p9 = pneg %p707_p13 }
  0xa9   : > { %p714_p12 = por %p713_p11, %p712_p8 }
  0xab   : > { %p715_p3 = pnand %p714_p12, %p708_p9 }
  0xad   : > { %718 = shalt.err (!%p715_p3)
}
  0xae   : > { %541 = dma.vmem_to_hbm [thread:$0]  (%p1147_p6), %s1012_s16, 512, %s1046_s19, %s355_s14  }
  0xaf PF: > { %s395_s17 = sand.u32 1, %s755_s25   ;;  %p1148_p4 = scmp.ne.s32.totalorder %s1130_s11, 0 }
  0xb0   : > { %p1149_p0 = scmp.ge.s32.totalorder %s767_s28, 2  ;;  %s396_s9 = scalar_lea.sflag [#allocation6], %s395_s17 }
  0xb2   : > { %p552_p1 = pnand %p1149_p0, %p1148_p4 }
  0xb4   : > { %746 = dma.done.wait (!%p552_p1), %s396_s9, 512  }
  0xb5   : > { %748 = vsyncadd (!%p552_p1), %s396_s9, 4294966784  ;;  %s405_s8 = scalar_lea.sflag [#allocation11], %s395_s17 }
  0xb6   : > { %750 = dma.done.wait (!%p552_p1), %s405_s8, 512  }
  0xb7   : > { %752 = vsyncadd (!%p552_p1), %s405_s8, 4294966784  ;;  %p28_p6 = scmp.ge.s32.totalorder %s836_s30, 4   ;;  %s1150_s25 = smov %s759_s26 }
  0xb8   : > { %s1151_s26 = smov %s763_s27  ;;  %s1152_s27 = smov %s848_s7 }
  0xb9   : > { %s1153_s28 = smov %s836_s30  ;;  %30 = sbr.rel (!%p28_p6) target bundleno = 21 (0x15), region = 103 }
  0xc0   :  { %410 = vsyncpa [#allocation5], 1 }
  0xc1   :  { %412 = vsyncpa [#allocation5 + $0x1], 1 }
  0xc2   :  { %413 = vsyncpa [#allocation8], 1 }
  0xc3   :  { %415 = vsyncpa [#allocation8 + $0x1], 1 }
  0xc4   :  { %416 = vsyncpa [#allocation6], 1 }
  0xc5   :  { %418 = vsyncpa [#allocation6 + $0x1], 1 }
  0xc6   :  { %419 = vsyncpa [#allocation11], 1 }
  0xc7   :  { %421 = vsyncpa [#allocation11 + $0x1], 1 }

</bundles_post_ra>
